<compile_context>
chip_gen: v7x
topology: tpu7x:2x2x1
jax: 0.10.0
libtpu: 0.0.40
codegen_flags: <defaults>
</compile_context>

<pallas_src>
import math
import functools

import jax
import jax.numpy as jnp
from jax.experimental import pallas as pl
from jax.experimental.pallas import tpu as pltpu


_MIN_GRID_STEPS = 4          # target >= 4 grid steps for DMA/compute overlap + megacore
_MIN_TILE_IO_BYTES = 1 << 20  # keep >= ~1 MiB of real I/O per step (amortize ~0.35us/step)


def _make_pe_table(d_model: int, max_len: int, dtype=jnp.float32) -> jnp.ndarray:
    """Deterministic sinusoidal table, identical to the PyTorch __init__.

    Returned shape (max_len, 1, d_model) matches the registered buffer; it is
    cast to the activation dtype once here, not per forward call.
    """
    position = jnp.arange(0, max_len, dtype=jnp.float32)[:, None]           # (max_len, 1)
    div_term = jnp.exp(
        jnp.arange(0, d_model, 2, dtype=jnp.float32) * (-math.log(10000.0) / d_model)
    )                                                                        # (d_model//2,)
    pe = jnp.zeros((max_len, d_model), dtype=jnp.float32)
    pe = pe.at[:, 0::2].set(jnp.sin(position * div_term))
    pe = pe.at[:, 1::2].set(jnp.cos(position * div_term))
    return pe.astype(dtype)[:, None, :]                                      # (max_len, 1, d_model)


def _round_up(v: int, m: int) -> int:
    return ((v + m - 1) // m) * m


def _vmem_budget_and_limit():
    """Per-generation VMEM budget (tile sizing) and scoped limit (Mosaic)."""
    cap = 64 << 20  # conservative default = v7x per-TC physical VMEM
    if jax.default_backend() == "tpu":
        try:
            cap = int(getattr(pltpu.get_tpu_info(), "vmem_capacity_bytes", cap))
        except Exception:
            pass
    budget = min(cap // 4, 48 << 20)   # ~16 MiB on v7x, ~32 MiB on v5e/v6e
    limit = min(cap // 2, 96 << 20)    # ~32 MiB on v7x, ~64 MiB on v5e/v6e
    return budget, limit


def _choose_seq_tile(S: int, B: int, D: int, itemsize: int,
                     in_kernel_dropout: bool, vmem_budget: int) -> int:
    """Seq-tile so the per-step VMEM footprint (incl. padding, double-buffering
    and training-mode temporaries) stays within budget, while keeping >= ~4
    grid steps and >= ~1 MiB of real I/O per tile when the shape allows it."""
    sublane = 8 * max(1, 4 // itemsize)          # 8 (f32) / 16 (bf16) / 32 (int8)
    pad_b = _round_up(max(B, 1), sublane)        # batch sits on the sublane axis
    pad_d = _round_up(max(D, 1), 128)            # d_model sits on the lane axis

    x_row = pad_b * pad_d * itemsize             # one seq-row of the x/out tile (padded)
    pe_row = sublane * pad_d * itemsize          # pe block is (ts, 1, D)
    tmp_row = 3 * pad_b * pad_d * 4 if in_kernel_dropout else 0  # bits + mask + f32 product
    per_row = 2 * x_row + 2 * x_row + 2 * pe_row + tmp_row       # double-buffered x, out, pe

    max_ts = max(8, ((vmem_budget // per_row) // 8) * 8)

    if S <= 8:
        return S

    # Prefer >= _MIN_GRID_STEPS steps so read/compute/writeback overlap and both
    # v7x TensorCores get work...
    ts = min(S, max_ts, _round_up(pl.cdiv(S, _MIN_GRID_STEPS), 8))
    # ...but never shrink a tile below ~1 MiB of real I/O (per-step overhead).
    io_row = max(1, 2 * B * D * itemsize)
    ts_floor = min(S, max_ts, _round_up(pl.cdiv(_MIN_TILE_IO_BYTES, io_row), 8))
    return max(ts, ts_floor, 8)


def _make_kernel(dropout_p: float, in_kernel_dropout: bool):
    if in_kernel_dropout:
        # Signed-int threshold on raw PRNG bits: keep iff bits >= T, with
        # P(keep) = 1 - p to within 2^-32 (not bit-identical to a float-uniform
        # compare, but negligible).  One compare, no shift, no extra temporary.
        t = int(round(dropout_p * float(1 << 32))) - (1 << 31)
        t = max(-(1 << 31), min(t, (1 << 31) - 1))
        scale = 1.0 / (1.0 - dropout_p)

    def kernel(seed_ref, x_ref, pe_ref, o_ref):
        # x_ref / o_ref: (ts, B, D); pe_ref: (ts, 1, D) broadcast over batch.
        # No (S, B*D) pe slab ever touches HBM.
        y = x_ref[...] + pe_ref[...]
        if in_kernel_dropout:
            # Per-tile reseed keeps grid iterations independent ("parallel").
            # Mask is fully determined by (seed, program_id, tile size) -- vary
            # the seed per training step.
            pltpu.prng_seed(seed_ref[0], pl.program_id(0))
            bits = pltpu.bitcast(pltpu.prng_random_bits(y.shape), jnp.int32)
            keep = bits >= jnp.int32(t)
            # Inverted dropout; scale in f32, cast at the store (bf16 parity).
            y = jnp.where(keep,
                          y.astype(jnp.float32) * jnp.float32(scale),
                          jnp.float32(0.0))
        o_ref[...] = y.astype(o_ref.dtype)

    return kernel


@functools.partial(jax.jit, static_argnames=("dropout_p", "training"))
def positional_encoding_forward(x, pe, seed, *, dropout_p=0.1, training=False):
    """x: (S, B, D); pe: (max_len, 1, D) or (max_len, D); seed: int32 (1,)."""
    S, B, D = x.shape

    # Tiny (S, 1, D) table in the activation dtype (cast is a no-op when pe was
    # built with _make_pe_table(..., dtype=x.dtype) at init).
    pe_blk = pe[:S] if pe.ndim == 3 else pe[:S][:, None, :]
    if pe_blk.dtype != x.dtype:
        pe_blk = pe_blk.astype(x.dtype)

    do_dropout = bool(training) and float(dropout_p) > 0.0
    # The TPU hardware PRNG has no CPU/interpret lowering; only emit it on TPU.
    in_kernel_dropout = do_dropout and (jax.default_backend() == "tpu")

    budget, vmem_limit = _vmem_budget_and_limit()
    itemsize = jnp.dtype(x.dtype).itemsize
    ts = _choose_seq_tile(S, B, D, itemsize, in_kernel_dropout, budget)
    grid = (pl.cdiv(S, ts),)

    kernel = _make_kernel(float(dropout_p), in_kernel_dropout)

    grid_spec = pltpu.PrefetchScalarGridSpec(
        num_scalar_prefetch=1,  # seed lands in SMEM
        grid=grid,
        in_specs=[
            pl.BlockSpec((ts, B, D), lambda i, seed_ref: (i, 0, 0)),  # x
            pl.BlockSpec((ts, 1, D), lambda i, seed_ref: (i, 0, 0)),  # pe (broadcast in-kernel)
        ],
        out_specs=pl.BlockSpec((ts, B, D), lambda i, seed_ref: (i, 0, 0)),
        # Default pipeline depth 2: bigger blocks beat deeper buffering here.
    )

    out = pl.pallas_call(
        kernel,
        out_shape=jax.ShapeDtypeStruct((S, B, D), x.dtype),
        grid_spec=grid_spec,
        compiler_params=pltpu.CompilerParams(
            dimension_semantics=("parallel",),   # per-tile reseed => independent steps
            vmem_limit_bytes=vmem_limit,
        ),
    )(seed, x, pe_blk)

    if do_dropout and not in_kernel_dropout:
        # Portable fallback for non-TPU backends (e.g. interpret mode): same
        # inverted-dropout semantics, mask generated with jax.random.
        key = jax.random.PRNGKey(seed[0])
        keep = jax.random.bernoulli(key, 1.0 - float(dropout_p), out.shape)
        out = jnp.where(keep,
                        out.astype(jnp.float32) / jnp.float32(1.0 - float(dropout_p)),
                        jnp.float32(0.0)).astype(x.dtype)
    return out


if __name__ == "__main__":
    # Small shapes consistent with the module: seq=8, batch=2, d_model=32.
    S, B, D = 8, 2, 32
    MAX_LEN = 5000

    key = jax.random.PRNGKey(0)
    x = jax.random.normal(key, (S, B, D), dtype=jnp.float32)
    pe = _make_pe_table(D, MAX_LEN, dtype=x.dtype)          # (MAX_LEN, 1, D), cast once at init
    seed = jnp.zeros((1,), dtype=jnp.int32)

    ref = x + pe[:S]                                        # (S,1,D) broadcasts over B

    # Eval-mode forward (dropout is identity, matching nn.Module.eval()).
    out = jax.block_until_ready(
        positional_encoding_forward(x, pe, seed, dropout_p=0.1, training=False))
    assert out.shape == (S, B, D)
    assert jnp.allclose(out, ref, atol=1e-6), "eval-mode mismatch vs reference"

    # Training-mode forward: every element is either 0 (dropped) or the
    # reference scaled by 1/(1-p) (kept, inverted dropout).
    p = 0.1
    out_t = jax.block_until_ready(
        positional_encoding_forward(x, pe, seed, dropout_p=p, training=True))
    assert out_t.shape == (S, B, D)
    scaled = jnp.broadcast_to(ref / (1.0 - p), out_t.shape)
    ok = jnp.isclose(out_t, 0.0, atol=1e-6) | jnp.isclose(out_t, scaled, rtol=1e-5, atol=1e-5)
    assert bool(jnp.all(ok)), "training-mode values are not {0, (x+pe)/(1-p)}"

    print("KERNEL_OK")
</pallas_src>

<mosaic_0001>
module attributes {stable_mosaic.version = 11 : i64} {
  func.func @kernel(%arg0: i32, %arg1: memref<1xi32, #tpu.memory_space<smem>>, %arg2: memref<8x2x32xf32, #tpu.memory_space<vmem>>, %arg3: memref<8x1x32xf32, #tpu.memory_space<vmem>>, %arg4: memref<8x2x32xf32, #tpu.memory_space<vmem>>) attributes {dimension_semantics = [#tpu.dimension_semantics<parallel>], iteration_bounds = array<i64: 1>, scalar_prefetch = 1 : i64, scratch_operands = 0 : i64, tpu.core_type = #tpu.core_type<tc>, window_params = [{transform_indices = @transform_0, window_bounds = array<i64: 8, 2, 32>}, {transform_indices = @transform_1, window_bounds = array<i64: 8, 1, 32>}, {transform_indices = @transform_2, window_bounds = array<i64: 8, 2, 32>}]} {
    %c0 = arith.constant 0 : index
    %c0_0 = arith.constant 0 : index
    %c0_1 = arith.constant 0 : index
    %0 = vector.load %arg2[%c0, %c0_0, %c0_1] : memref<8x2x32xf32, #tpu.memory_space<vmem>>, vector<8x2x32xf32>
    %c0_2 = arith.constant 0 : index
    %c0_3 = arith.constant 0 : index
    %c0_4 = arith.constant 0 : index
    %1 = vector.load %arg3[%c0_2, %c0_3, %c0_4] : memref<8x1x32xf32, #tpu.memory_space<vmem>>, vector<8x1x32xf32>
    %2 = vector.broadcast %1 : vector<8x1x32xf32> to vector<8x2x32xf32>
    %3 = arith.addf %0, %2 : vector<8x2x32xf32>
    %c0_5 = arith.constant 0 : index
    %c0_6 = arith.constant 0 : index
    %c0_7 = arith.constant 0 : index
    %4 = vector.load %arg4[%c0_5, %c0_6, %c0_7] : memref<8x2x32xf32, #tpu.memory_space<vmem>>, vector<8x2x32xf32>
    tpu.vector_store %arg4[%c0_5, %c0_6, %c0_7], %3 {strides = array<i32>} : memref<8x2x32xf32, #tpu.memory_space<vmem>>, vector<8x2x32xf32>,
    return
  }
  func.func @transform_0(%arg0: i32, %arg1: memref<1xi32, #tpu.memory_space<smem>>) -> (i32, i32, i32) {
    %c0_i32 = arith.constant 0 : i32
    %c0_i32_0 = arith.constant 0 : i32
    %c0_i32_1 = arith.constant 0 : i32
    return %arg0, %c0_i32, %c0_i32_0 : i32, i32, i32
  }
  func.func @transform_1(%arg0: i32, %arg1: memref<1xi32, #tpu.memory_space<smem>>) -> (i32, i32, i32) {
    %c0_i32 = arith.constant 0 : i32
    %c0_i32_0 = arith.constant 0 : i32
    %c0_i32_1 = arith.constant 0 : i32
    return %arg0, %c0_i32, %c0_i32_0 : i32, i32, i32
  }
  func.func @transform_2(%arg0: i32, %arg1: memref<1xi32, #tpu.memory_space<smem>>) -> (i32, i32, i32) {
    %c0_i32 = arith.constant 0 : i32
    %c0_i32_0 = arith.constant 0 : i32
    %c0_i32_1 = arith.constant 0 : i32
    return %arg0, %c0_i32, %c0_i32_0 : i32, i32, i32
  }
}

</mosaic_0001>

<bundles_post_ra>
// kernel: positional_encoding_forward.1
= control target key start
LH: loop header
LB: loop body
LE: loop exit
PB: predicated region body
PF: predicated region fallthrough
CT: control target
= control target key end

     0   :  { %vm86_vm0 = vcmask 254976   ;;  %s237_s0 = inlined_call_operand.<no memory space> [shape: s32[1], index: 0, kind: input, shape index: {}]   ;;  %s238_s1 = inlined_call_operand.vmem [shape: f32[8,2,32], index: 1, kind: input, shape index: {}]   ;;  %s239_s2 = inlined_call_operand.vmem [shape: f32[8,1,32], index: 2, kind: input, shape index: {}]   ;;  %s240_s3 = inlined_call_operand.hbm [shape: f32[8,2,32], index: 3, kind: output, shape index: {}]  }
   0x1   :  { %v14_v0 = vld [vmem:[%s238_s1] sm:$0x3]  ;;  %v15_v3 = vld [vmem:[%s238_s1 + $0x2] sm:$0x3]  ;;  %v16_v5 = vld [vmem:[%s238_s1 + $0x4] sm:$0x3] }
   0x2   :  { %v111_v1 = vld [vmem:[%s239_s2] ss:$0 sm:$0xff]  ;;  %v112_v4 = vld [vmem:[%s239_s2 + $0x1] ss:$0 sm:$0xff]  ;;  %v113_v7 = vld [vmem:[%s239_s2 + $0x2] ss:$0 sm:$0xff] }
   0x3   :  { %v78_v2 = vadd.f32 %v111_v1, %v14_v0  ;;  %v79_v6 = vadd.f32 %v112_v4, %v15_v3  ;;  %v17_v8 = vld [vmem:[%s238_s1 + $0x6] sm:$0x3]  ;;  %v114_v9 = vld [vmem:[%s239_s2 + $0x3] ss:$0 sm:$0xff]  ;;  %v80_v10 = vadd.f32 %v113_v7, %v16_v5  ;;  %v18_v12 = vld [vmem:[%s238_s1 + $0x8] sm:$0x3] }
   0x4   :  { %v81_v11 = vadd.f32 %v114_v9, %v17_v8  ;;  %v115_v13 = vld [vmem:[%s239_s2 + $0x4] ss:$0 sm:$0xff]  ;;  %v19_v14 = vld [vmem:[%s238_s1 + $0xa] sm:$0x3]  ;;  %v116_v16 = vld [vmem:[%s239_s2 + $0x5] ss:$0 sm:$0xff] }
   0x5   :  { %87 = vst.msk [vmem:[#allocation4] sm:$0x3] %vm86_vm0, %v78_v2  ;;  %88 = vst.msk [vmem:[#allocation4 + $0x2] sm:$0x3] %vm86_vm0, %v79_v6  ;;  %v82_v15 = vadd.f32 %v115_v13, %v18_v12  ;;  %v20_v17 = vld [vmem:[%s238_s1 + $0xc] sm:$0x3]  ;;  %v83_v19 = vadd.f32 %v116_v16, %v19_v14 }
   0x6   :  { %v117_v18 = vld [vmem:[%s239_s2 + $0x6] ss:$0 sm:$0xff]  ;;  %89 = vst.msk [vmem:[#allocation4 + $0x4] sm:$0x3] %vm86_vm0, %v80_v10  ;;  %90 = vst.msk [vmem:[#allocation4 + $0x6] sm:$0x3] %vm86_vm0, %v81_v11 }
   0x7   :  { %v84_v20 = vadd.f32 %v117_v18, %v20_v17  ;;  %v21_v21 = vld [vmem:[%s238_s1 + $0xe] sm:$0x3]  ;;  %v118_v22 = vld [vmem:[%s239_s2 + $0x7] ss:$0 sm:$0xff] }
   0x8   :  { %9 = vsyncpa [#allocation5], 0  ;;  %91 = vst.msk [vmem:[#allocation4 + $0x8] sm:$0x3] %vm86_vm0, %v82_v15  ;;  %v85_v23 = vadd.f32 %v118_v22, %v21_v21  ;;  %s146_s0 = smov [#allocation4]  }
   0x9   :  { %s100_s16 = sshll.u32 %s146_s0, 4  ;;  %92 = vst.msk [vmem:[#allocation4 + $0xa] sm:$0x3] %vm86_vm0, %v83_v19  ;;  %93 = vst.msk [vmem:[#allocation4 + $0xc] sm:$0x3] %vm86_vm0, %v84_v20  ;;  %s101_s16 = int_to_ptr.vmem [resolvable:$true] %s100_s16 }
   0xa   :  { %94 = vst.msk [vmem:[#allocation4 + $0xe] sm:$0x3] %vm86_vm0, %v85_v23  ;;  %s122_s17 = scalar_lea.vmem %s101_s16, 256  ;;  %p127_p1 = scmp.lt.s32.totalorder %s101_s16, %s101_s16 }
   0xb   :  { %p123_p0 = scmp.ne.s32.totalorder %s101_s16, %s122_s17  ;;  %p128_p2 = scmp.lt.s32.totalorder %s122_s17, %s122_s17 }
   0xd   :  { %p129_p3 = por %p128_p2, %p127_p1 }
   0xf   :  { %p130_p4 = pnand %p129_p3, %p123_p0 }
  0x11   :  { %133 = shalt.err (!%p130_p4)
}
  0x12   :  { %s134_s18 = scalar_lea.hbm %s240_s3, 256 }
  0x13   :  { %p135_p5 = scmp.ne.s32.totalorder %s240_s3, %s134_s18  ;;  %p138_p6 = scmp.lt.u32.totalorder %s134_s18, %s240_s3 }
  0x15   :  { %p140_p7 = pnand %p138_p6, %p135_p5 }
  0x17   :  { %143 = shalt.err (!%p140_p7)
}
  0x18   :  { %s147_s23 = smov 32   ;;  %s148_s24 = smov 2  }
  0x19   :  { %106 = dma.vmem_to_hbm [thread:$0]  %s101_s16, 256, %s240_s3, [#allocation5], %s147_s23, %s147_s23, %s148_s24  }
  0x1a   :  { %144 = dma.done.wait [#allocation5], 256  }
  0x1b   :  { %145 = vsyncadd [#allocation5], 4294967040 }
  0x1c   :  { %110 = vsyncpa [#allocation5], 1 }

</bundles_post_ra>
